<compile_context>
chip_gen: v5e
topology: v5e:2x2
jax: 0.10.0
libtpu: 0.0.40
codegen_flags: <defaults>
</compile_context>

<pallas_src>
import jax
import jax.numpy as jnp
from jax.experimental import pallas as pl
from jax.experimental.pallas import tpu as pltpu


# Minimum dense sublane count per dtype byte-width (sub-32-bit packs sublanes).
_MIN_SUBLANE = {4: 8, 2: 16, 1: 32}

# Per-block byte budget.  2 MiB blocks => ~8 MiB of double-buffered VMEM,
# which fits v5e's 16 MiB scoped default as well as v6e/v7x, for any B.
_BLOCK_BYTES = 2 * 1024 * 1024

# Below this size the fixed pallas_call / per-step overhead dominates; let XLA
# fuse the broadcast multiply instead.
_XLA_FALLBACK_BYTES = 256 * 1024


def _drop_path_kernel(m_ref, x_ref, o_ref):
    # m_ref: (tile_b, 1) scaled keep-mask, values in {0, 1/keep_prob}.
    # x_ref / o_ref: (tile_b, tile_f) tile of the flattened (B, F) activation.
    o_ref[...] = (x_ref[...] * m_ref[...]).astype(o_ref.dtype)


def _choose_tiles(bp: int, fp: int, itemsize: int):
    """Pick (tile_b, tile_f): sublane-dense rows, lane-dense (128x) columns,
    with block bytes bounded by _BLOCK_BYTES regardless of batch size."""
    sub = _MIN_SUBLANE.get(itemsize, 8)
    b_cap = 8 * sub                           # 64 rows f32 / 128 bf16 / 256 int8
    tile_b = bp if bp <= b_cap else b_cap     # full axis, or a multiple of `sub`

    if fp <= 512:
        tile_f = fp                           # full width (single block)
    else:
        tile_f = _BLOCK_BYTES // max(1, tile_b * itemsize)
        tile_f = max(512, (tile_f // 128) * 128)
        tile_f = min(tile_f, (fp // 128) * 128)   # >= 512 since fp > 512
    return tile_b, tile_f


def drop_path_pallas(x, drop_prob: float = 0.0, training: bool = False, key=None,
                     xla_fallback_bytes: int = _XLA_FALLBACK_BYTES):
    """JAX/Pallas equivalent of drop_path(x, drop_prob, training)."""
    if drop_prob == 0.0 or not training:
        return x
    if drop_prob >= 1.0:
        # keep_prob == 0 would make 1/keep_prob = inf (0*inf = NaN); everything drops.
        return jnp.zeros_like(x)

    keep_prob = 1.0 - float(drop_prob)
    if key is None:
        # NOTE: callers should thread a fresh key each step during training;
        # this deterministic fallback only preserves the previous API.
        key = jax.random.PRNGKey(0)

    orig_shape = x.shape
    B = int(orig_shape[0])
    F = int(x.size) // B
    itemsize = jnp.dtype(x.dtype).itemsize

    # One uniform per sample, matching torch.rand((B,1,...,1)) semantics:
    # mask = floor(keep_prob + U[0,1)) in {0, 1}; fold 1/keep_prob in once.
    u = jax.random.uniform(key, (B, 1), dtype=jnp.float32)
    mask_scaled = jnp.floor(jnp.float32(keep_prob) + u) * jnp.float32(1.0 / keep_prob)

    # Multiply in the input's native dtype for floating inputs (matches torch,
    # keeps bf16 vreg pressure low on v6e/v7x; v5e promotes internally anyway).
    m_dtype = x.dtype if jnp.issubdtype(x.dtype, jnp.floating) else jnp.float32
    mask_scaled = mask_scaled.astype(m_dtype)

    if B * F * itemsize < xla_fallback_bytes:
        bshape = (B,) + (1,) * (max(x.ndim, 1) - 1)
        return (x * mask_scaled.reshape(bshape)).astype(x.dtype)

    # Dtype-aware sublane fold: if B is below the dtype's dense sublane count,
    # fold part of F into the row axis so vregs / VMEM tiles stay dense.
    min_sub = _MIN_SUBLANE.get(itemsize, 8)
    k = 1
    if B < min_sub and min_sub % B == 0 and F % (min_sub // B) == 0:
        k = min_sub // B
    Bp, Fp = B * k, F // k

    xf = x.reshape(Bp, Fp)
    m = jnp.repeat(mask_scaled, k, axis=0) if k > 1 else mask_scaled    # (Bp, 1)

    tile_b, tile_f = _choose_tiles(Bp, Fp, itemsize)
    grid = (pl.cdiv(Bp, tile_b), pl.cdiv(Fp, tile_f))

    out = pl.pallas_call(
        _drop_path_kernel,
        out_shape=jax.ShapeDtypeStruct((Bp, Fp), x.dtype),
        grid=grid,
        in_specs=[
            pl.BlockSpec((tile_b, 1), lambda i, j: (i, 0)),        # mask: resident over j
            pl.BlockSpec((tile_b, tile_f), lambda i, j: (i, j)),   # x tile (pipelined)
        ],
        out_specs=pl.BlockSpec((tile_b, tile_f), lambda i, j: (i, j)),
        compiler_params=pltpu.CompilerParams(
            # TODO(synk): on v7x, profile with xprof and switch the leading grid
            # axis to pltpu.CORE_PARALLEL (or pl.core_map) if only one TC is active.
            dimension_semantics=("parallel", "parallel"),
        ),
        cost_estimate=pl.CostEstimate(
            flops=Bp * Fp,
            transcendentals=0,
            bytes_accessed=2 * Bp * Fp * itemsize + Bp * jnp.dtype(m_dtype).itemsize,
        ),
    )(m, xf)

    return out.reshape(orig_shape)


class DropPath:
    """Drop paths (Stochastic Depth) per sample (Pallas-backed)."""

    def __init__(self, drop_prob=None):
        self.drop_prob = drop_prob if drop_prob is not None else 0.0
        self.training = True

    def __call__(self, x, key=None):
        return drop_path_pallas(x, self.drop_prob, self.training, key=key)


if __name__ == "__main__":
    key = jax.random.PRNGKey(0)
    kx, kmask = jax.random.split(key)
    # Small NCHW-shaped input, consistent with how DropPath is used in MViT.
    x = jax.random.normal(kx, (2, 4, 16, 16), dtype=jnp.float32)

    module = DropPath(drop_prob=0.5)
    module.training = True

    # Force the Pallas path at this tiny demo size (the default wrapper routes
    # small activations to a fused XLA multiply).
    y = jax.block_until_ready(
        drop_path_pallas(x, module.drop_prob, module.training, key=kmask,
                         xla_fallback_bytes=0))

    # Default dispatch (XLA fallback at this size) must agree with the kernel.
    y_fb = jax.block_until_ready(module(x, key=kmask))
    assert bool(jnp.allclose(y, y_fb)), "Pallas and XLA fallback paths disagree"

    # Sanity: each sample is either dropped (all zeros) or scaled by 1/keep_prob.
    keep_prob = 0.5
    xf = x.reshape(x.shape[0], -1)
    yf = y.reshape(y.shape[0], -1)
    for b in range(x.shape[0]):
        dropped = bool(jnp.allclose(yf[b], 0.0))
        kept = bool(jnp.allclose(yf[b], xf[b] / keep_prob, atol=1e-5))
        assert dropped or kept, "per-sample DropPath semantics violated"

    # Eval path / drop_prob == 0 is an exact identity; drop_prob >= 1 zeros out.
    module.training = False
    assert bool(jnp.allclose(module(x), x))
    assert bool(jnp.allclose(drop_path_pallas(x, 1.0, True, key=kmask), 0.0))

    print("KERNEL_OK")
</pallas_src>

<mosaic_0001>
module attributes {stable_mosaic.version = 11 : i64} {
  func.func @_drop_path_kernel(%arg0: i32, %arg1: i32, %arg2: memref<8x1xf32, #tpu.memory_space<vmem>>, %arg3: memref<8x256xf32, #tpu.memory_space<vmem>>, %arg4: memref<8x256xf32, #tpu.memory_space<vmem>>) attributes {dimension_semantics = [#tpu.dimension_semantics<parallel>, #tpu.dimension_semantics<parallel>], iteration_bounds = array<i64: 1, 1>, scalar_prefetch = 0 : i64, scratch_operands = 0 : i64, tpu.core_type = #tpu.core_type<tc>, window_params = [{transform_indices = @transform_0, window_bounds = array<i64: 8, 1>}, {transform_indices = @transform_1, window_bounds = array<i64: 8, 256>}, {transform_indices = @transform_2, window_bounds = array<i64: 8, 256>}]} {
    %c0 = arith.constant 0 : index
    %c0_0 = arith.constant 0 : index
    %0 = vector.load %arg3[%c0, %c0_0] : memref<8x256xf32, #tpu.memory_space<vmem>>, vector<8x256xf32>
    %c0_1 = arith.constant 0 : index
    %c0_2 = arith.constant 0 : index
    %1 = vector.load %arg2[%c0_1, %c0_2] : memref<8x1xf32, #tpu.memory_space<vmem>>, vector<8x1xf32>
    %2 = vector.broadcast %1 : vector<8x1xf32> to vector<8x256xf32>
    %3 = arith.mulf %0, %2 : vector<8x256xf32>
    %c0_3 = arith.constant 0 : index
    %c0_4 = arith.constant 0 : index
    %4 = vector.load %arg4[%c0_3, %c0_4] : memref<8x256xf32, #tpu.memory_space<vmem>>, vector<8x256xf32>
    tpu.vector_store %arg4[%c0_3, %c0_4], %3 {strides = array<i32>} : memref<8x256xf32, #tpu.memory_space<vmem>>, vector<8x256xf32>,
    return
  }
  func.func @transform_0(%arg0: i32, %arg1: i32) -> (i32, i32) {
    %c0_i32 = arith.constant 0 : i32
    %c0_i32_0 = arith.constant 0 : i32
    return %arg0, %c0_i32 : i32, i32
  }
  func.func @transform_1(%arg0: i32, %arg1: i32) -> (i32, i32) {
    %c0_i32 = arith.constant 0 : i32
    return %arg0, %arg1 : i32, i32
  }
  func.func @transform_2(%arg0: i32, %arg1: i32) -> (i32, i32) {
    %c0_i32 = arith.constant 0 : i32
    return %arg0, %arg1 : i32, i32
  }
}

</mosaic_0001>

<bundles_post_ra>
// kernel: tpu_custom_call.1
= control target key start
LH: loop header
LB: loop body
LE: loop exit
PB: predicated region body
PF: predicated region fallthrough
CT: control target
= control target key end

     0   :  { %7 = vsyncpa [#allocation3], 0  ;;  %s138_s0 = inlined_call_operand.vmem [shape: f32[8,1], index: 0, kind: input, shape index: {}]   ;;  %s139_s1 = inlined_call_operand.hbm [shape: f32[8,256], index: 1, kind: input, shape index: {}]   ;;  %s140_s2 = inlined_call_operand.hbm [shape: f32[8,256], index: 2, kind: output, shape index: {}]  }
   0x1   :  { %8 = vsyncpa [#allocation4], 0  ;;  %s16_s11 = sshll.u32 %s139_s1, 4  ;;  %s111_s12 = smov [#allocation2]   ;;  %s17_s11 = int_to_ptr.hbm [resolvable:$true] %s16_s11 }
   0x2   :  { %s18_s13 = sshll.u32 %s111_s12, 4  ;;  %s19_s13 = int_to_ptr.vmem [resolvable:$true] %s18_s13 }
   0x3   :  { %21 = dma.hbm_to_vmem [thread:$0]  %s17_s11, 256, %s19_s13, [#allocation3]  }
   0x4   :  { %107 = dma.done.wait [#allocation3], 256  }
   0x5   :  { %108 = vsyncadd [#allocation3], 4294967040  ;;  %v112_v0 = vmov 0   ;;  %v28_v1 = vld [vmem:[%s138_s0] sm:$0xff]  ;;  %v27_v3 = vld [vmem:[#allocation2 + $0x8] sm:$0xff]  ;;  %s113_s16 = smov [#allocation5]  }
   0x6   :  { %58 = vset.pattern.permute.xlu0 %v112_v0  ;;  %v26_v2 = vld [vmem:[#allocation2] sm:$0xff]  ;;  %s43_s17 = sshll.u32 %s113_s16, 4  ;;  %s45_s19 = sshll.u32 %s140_s2, 4  ;;  %s44_s17 = int_to_ptr.vmem [resolvable:$true] %s43_s17  ;;  %s46_s19 = int_to_ptr.hbm [resolvable:$true] %s45_s19 }
   0x7   :  { %31 = vperm.xlu0 %58, %v28_v1  }
  0x79   :  { %v32_v4 = vpop.permute.xlu0 %31 }
  0x7a   :  { %v34_v5 = vmul.f32 %v32_v4, %v26_v2  ;;  %v35_v6 = vmul.f32 %v32_v4, %v27_v3 }
  0x7c   :  { %36 = vst [vmem:[#allocation5] sm:$0xff] %v34_v5 }
  0x7d   :  { %37 = vst [vmem:[#allocation5 + $0x8] sm:$0xff] %v35_v6 }
  0x7e   :  { %48 = dma.vmem_to_hbm [thread:$0]  %s44_s17, 256, %s46_s19, [#allocation4]  }
  0x7f   :  { %109 = dma.done.wait [#allocation4], 256  }
  0x80   :  { %110 = vsyncadd [#allocation4], 4294967040 }
  0x81   :  { %53 = vsyncpa [#allocation3], 1 }
  0x82   :  { %54 = vsyncpa [#allocation4], 1 }

</bundles_post_ra>
